<compile_context>
chip_gen: v7x
topology: tpu7x:2x2x1
jax: 0.10.0
libtpu: 0.0.40
codegen_flags: <defaults>
</compile_context>

<pallas_src>
import functools
import math

import jax
import jax.numpy as jnp
from jax.experimental import pallas as pl
from jax.experimental.pallas import tpu as pltpu

LANE = 128
HID1 = 128
HID2 = 64
MAX_SINGLE_TILE = 512   # batch tile for the gridded (large-batch) path


# ----------------------------------------------------------------------------
# Kernel
# ----------------------------------------------------------------------------
def dqn_kernel(x_ref, w_ref, o_ref, *, in_size, k1p):
    """x_ref: (B, in_size) f32; w_ref: packed bf16 slab; o_ref: (B, 128) f32.

    Slab layout (rows):
      [0,            k1p)        : W1 (in_size x 128, zero-padded rows)
      [k1p,          k1p+128)    : W2 (128 x 64, zero-padded cols)
      [k1p+128,      k1p+256)    : W3 (64 x out_size, zero-padded rows/cols)
      [k1p+256,      k1p+272)    : rows 0/1/2 hold b1/b2/b3 (bf16), rest zero
    All offsets are multiples of 16 -> zero-cost bf16-tile-aligned views.
    """
    f32 = jnp.float32
    bf16 = jnp.bfloat16

    x = x_ref[...].astype(bf16)                       # (B, in_size)
    w1 = w_ref[0:in_size, :]                          # (in_size, 128)
    w2 = w_ref[k1p:k1p + HID1, :]                     # (128, 128)  cols>=64 zero
    w3 = w_ref[k1p + HID1:k1p + 2 * HID1, :]          # (128, 128)  rows>=64, cols>=out zero
    boff = k1p + 2 * HID1
    b1 = w_ref[boff + 0:boff + 1, :].astype(f32)      # (1, 128)
    b2 = w_ref[boff + 1:boff + 2, :].astype(f32)
    b3 = w_ref[boff + 2:boff + 3, :].astype(f32)

    # fc1 + relu  (bf16 MXU operands, f32 accumulate, f32 epilogue)
    h = jnp.dot(x, w1, preferred_element_type=f32) + b1
    h = jnp.maximum(h, 0.0)
    # fc2 + relu  (padded lanes of b2/w2 are zero -> relu keeps them at 0)
    h = jnp.dot(h.astype(bf16), w2, preferred_element_type=f32) + b2
    h = jnp.maximum(h, 0.0)
    # fc3 (no activation); padded rows/lanes of w3/b3 are zero
    out = jnp.dot(h.astype(bf16), w3, preferred_element_type=f32) + b3
    o_ref[...] = out.astype(o_ref.dtype)


# ----------------------------------------------------------------------------
# Parameter packing (done once, outside the hot path)
# ----------------------------------------------------------------------------
def _round_up(n, m):
    return ((n + m - 1) // m) * m


def pack_dqn_params(params):
    """Pack (w1,b1,w2,b2,w3,b3) into ONE bf16 slab (weights + biases)."""
    w1, b1, w2, b2, w3, b3 = params
    in_size = w1.shape[0]
    out_size = w3.shape[1]

    # Guard rails: the kernel's static row offsets / lane widths assume these.
    assert w1.shape[1] == HID1 and HID1 == LANE, "kernel assumes fc1 width == 128"
    assert w2.shape == (HID1, HID2) and HID2 <= LANE
    assert w3.shape == (HID2, out_size) and out_size <= LANE
    k1p = max(16, _round_up(in_size, 16))             # bf16 (16,128) tile aligned
    assert k1p % 16 == 0 and in_size <= k1p, \
        "k1p must stay a multiple of 16 so W2/W3/bias slices are tile-aligned views"

    w1p = jnp.zeros((k1p, LANE), jnp.float32).at[:in_size, :HID1].set(w1)
    w2p = jnp.zeros((HID1, LANE), jnp.float32).at[:, :HID2].set(w2)
    w3p = jnp.zeros((HID1, LANE), jnp.float32).at[:HID2, :out_size].set(w3)
    # Biases folded into the slab (one fewer input DMA); bf16 rounding of the
    # biases is << the bf16 weight rounding already present.
    bp = jnp.zeros((16, LANE), jnp.float32)
    bp = bp.at[0, :HID1].set(b1.reshape(-1))
    bp = bp.at[1, :HID2].set(b2.reshape(-1))
    bp = bp.at[2, :out_size].set(b3.reshape(-1))

    wpack = jnp.concatenate([w1p, w2p, w3p, bp], axis=0).astype(jnp.bfloat16)
    meta = dict(in_size=in_size, out_size=out_size, k1p=k1p)
    return wpack, meta


# ----------------------------------------------------------------------------
# Forward wrapper (single jit over the whole path)
# ----------------------------------------------------------------------------
@functools.partial(jax.jit, static_argnames=("in_size", "out_size", "k1p"))
def _dqn_forward(x, wpack, *, in_size, out_size, k1p):
    batch = x.shape[0]
    x = x.astype(jnp.float32)

    # Small batch -> one full block (block == array dims waives (8,128) rule).
    # Large batch -> 512-row tiles over a parallel batch grid (2 TCs on v7x).
    tile_b = batch if batch <= MAX_SINGLE_TILE else MAX_SINGLE_TILE
    grid = (pl.cdiv(batch, tile_b),)

    flops = 2 * batch * (in_size * HID1 + HID1 * HID2 + HID2 * out_size)
    bytes_accessed = int(x.size) * 4 + int(wpack.size) * 2 + batch * LANE * 4

    out = pl.pallas_call(
        functools.partial(dqn_kernel, in_size=in_size, k1p=k1p),
        out_shape=jax.ShapeDtypeStruct((batch, LANE), jnp.float32),
        grid=grid,
        in_specs=[
            pl.BlockSpec((tile_b, in_size), lambda i: (i, 0)),   # activations
            pl.BlockSpec(wpack.shape, lambda i: (0, 0)),          # resident slab
        ],
        out_specs=pl.BlockSpec((tile_b, LANE), lambda i: (i, 0)),
        compiler_params=pltpu.CompilerParams(
            dimension_semantics=("parallel",)),
        cost_estimate=pl.CostEstimate(
            flops=flops, transcendentals=0, bytes_accessed=bytes_accessed),
    )(x, wpack)

    # Layout plumbing fused inside the same jit: strip lane padding.
    return out[:, :out_size]


def dqn_forward(x, wpack, meta):
    return _dqn_forward(x, wpack, **meta)


# ----------------------------------------------------------------------------
# Init + references
# ----------------------------------------------------------------------------
def init_linear(key, fan_in, fan_out):
    # torch.nn.Linear default init: U(-1/sqrt(fan_in), 1/sqrt(fan_in)).
    # Weight stored pre-transposed: (fan_in, fan_out).
    kw, kb = jax.random.split(key)
    bound = 1.0 / math.sqrt(fan_in)
    w = jax.random.uniform(kw, (fan_in, fan_out), jnp.float32, -bound, bound)
    b = jax.random.uniform(kb, (1, fan_out), jnp.float32, -bound, bound)
    return w, b


def init_dqn_params(key, input_size, output_size):
    k1, k2, k3 = jax.random.split(key, 3)
    w1, b1 = init_linear(k1, input_size, HID1)
    w2, b2 = init_linear(k2, HID1, HID2)
    w3, b3 = init_linear(k3, HID2, output_size)
    return (w1, b1, w2, b2, w3, b3)


def dqn_reference_f32(x, params):
    w1, b1, w2, b2, w3, b3 = params
    h1 = jnp.maximum(x @ w1 + b1, 0.0)
    h2 = jnp.maximum(h1 @ w2 + b2, 0.0)
    return h2 @ w3 + b3


def dqn_reference_bf16(x, params):
    # Same numerics as the kernel: bf16 operands (weights AND biases stored in
    # the bf16 slab), f32 accumulate, f32 epilogue.
    w1, b1, w2, b2, w3, b3 = params
    bf, f32 = jnp.bfloat16, jnp.float32
    b1, b2, b3 = (b.astype(bf).astype(f32) for b in (b1, b2, b3))
    h1 = jnp.maximum(
        jnp.dot(x.astype(bf), w1.astype(bf), preferred_element_type=f32) + b1, 0.0)
    h2 = jnp.maximum(
        jnp.dot(h1.astype(bf), w2.astype(bf), preferred_element_type=f32) + b2, 0.0)
    return jnp.dot(h2.astype(bf), w3.astype(bf), preferred_element_type=f32) + b3


# ----------------------------------------------------------------------------
if __name__ == "__main__":
    # Snake-AI style DQN: 11-dim state, 3 actions.
    input_size, output_size = 11, 3

    key = jax.random.PRNGKey(0)
    kx, kp, kxb = jax.random.split(key, 3)
    params = init_dqn_params(kp, input_size, output_size)
    wpack, meta = pack_dqn_params(params)

    # --- small inference batch (latency path: single full block) -------------
    x = jax.random.normal(kx, (4, input_size), jnp.float32)
    out = jax.block_until_ready(dqn_forward(x, wpack, meta))
    assert out.shape == (4, output_size)

    ref_bf16 = dqn_reference_bf16(x, params)
    assert jnp.allclose(out, ref_bf16, atol=2e-2, rtol=2e-2), "mismatch vs bf16 reference"
    ref_f32 = dqn_reference_f32(x, params)
    assert jnp.allclose(out, ref_f32, atol=1e-1, rtol=1e-1), "mismatch vs f32 reference"

    # Policy-parity check: argmax must agree wherever the top-2 Q gap is not
    # razor thin (bf16 weight rounding can legitimately flip near-ties).
    srt = jnp.sort(ref_bf16, axis=1)
    clear = (srt[:, -1] - srt[:, -2]) > 1e-3
    same_action = jnp.argmax(out, axis=1) == jnp.argmax(ref_bf16, axis=1)
    assert bool(jnp.all(jnp.where(clear, same_action, True))), "argmax disagreement"

    # --- replay-buffer batch (throughput path: parallel batch grid) ----------
    xb = jax.random.normal(kxb, (1024, input_size), jnp.float32)
    outb = jax.block_until_ready(dqn_forward(xb, wpack, meta))
    assert outb.shape == (1024, output_size)
    refb = dqn_reference_bf16(xb, params)
    assert jnp.allclose(outb, refb, atol=2e-2, rtol=2e-2), "mismatch vs bf16 reference (batched)"

    print("KERNEL_OK")
</pallas_src>

<mosaic_0001>
module attributes {stable_mosaic.version = 11 : i64} {
  func.func @dqn_kernel(%arg0: i32, %arg1: memref<4x11xf32, #tpu.memory_space<vmem>>, %arg2: memref<288x128xbf16, #tpu.memory_space<vmem>>, %arg3: memref<4x128xf32, #tpu.memory_space<vmem>>) attributes {dimension_semantics = [#tpu.dimension_semantics<parallel>], iteration_bounds = array<i64: 1>, scalar_prefetch = 0 : i64, scratch_operands = 0 : i64, tpu.core_type = #tpu.core_type<tc>, window_params = [{transform_indices = @transform_0, window_bounds = array<i64: 4, 11>}, {pipeline_mode = #tpu.pipeline_mode<synchronous>, transform_indices = @transform_1, window_bounds = array<i64: 288, 128>}, {transform_indices = @transform_2, window_bounds = array<i64: 4, 128>}]} {
    %c0 = arith.constant 0 : index
    %c0_0 = arith.constant 0 : index
    %0 = vector.load %arg1[%c0, %c0_0] : memref<4x11xf32, #tpu.memory_space<vmem>>, vector<4x11xf32>
    %1 = arith.truncf %0 : vector<4x11xf32> to vector<4x11xbf16>
    %c0_1 = arith.constant 0 : index
    %c0_2 = arith.constant 0 : index
    %2 = vector.load %arg2[%c0_1, %c0_2] : memref<288x128xbf16, #tpu.memory_space<vmem>>, vector<11x128xbf16>
    %c16 = arith.constant 16 : index
    %c0_3 = arith.constant 0 : index
    %3 = vector.load %arg2[%c16, %c0_3] : memref<288x128xbf16, #tpu.memory_space<vmem>>, vector<128x128xbf16>
    %c144 = arith.constant 144 : index
    %c0_4 = arith.constant 0 : index
    %4 = vector.load %arg2[%c144, %c0_4] : memref<288x128xbf16, #tpu.memory_space<vmem>>, vector<128x128xbf16>
    %c272 = arith.constant 272 : index
    %c0_5 = arith.constant 0 : index
    %5 = vector.load %arg2[%c272, %c0_5] : memref<288x128xbf16, #tpu.memory_space<vmem>>, vector<1x128xbf16>
    %6 = arith.extf %5 : vector<1x128xbf16> to vector<1x128xf32>
    %c273 = arith.constant 273 : index
    %c0_6 = arith.constant 0 : index
    %7 = vector.load %arg2[%c273, %c0_6] : memref<288x128xbf16, #tpu.memory_space<vmem>>, vector<1x128xbf16>
    %8 = arith.extf %7 : vector<1x128xbf16> to vector<1x128xf32>
    %c274 = arith.constant 274 : index
    %c0_7 = arith.constant 0 : index
    %9 = vector.load %arg2[%c274, %c0_7] : memref<288x128xbf16, #tpu.memory_space<vmem>>, vector<1x128xbf16>
    %10 = arith.extf %9 : vector<1x128xbf16> to vector<1x128xf32>
    %cst = arith.constant dense<0.000000e+00> : vector<4x128xf32>
    %11 = tpu.matmul %1, %2, %cst {dimension_numbers = #tpu.dot_dimension_numbers<[1], [0], [0], [1], [0, 0, 1, 1], [], []>} : vector<4x11xbf16>, vector<11x128xbf16>, vector<4x128xf32> -> vector<4x128xf32>
    %12 = vector.broadcast %6 : vector<1x128xf32> to vector<4x128xf32>
    %13 = arith.addf %11, %12 : vector<4x128xf32>
    %cst_8 = arith.constant 0.000000e+00 : f32
    %14 = vector.broadcast %cst_8 : f32 to vector<4x128xf32>
    %15 = arith.maximumf %13, %14 : vector<4x128xf32>
    %16 = arith.truncf %15 : vector<4x128xf32> to vector<4x128xbf16>
    %cst_9 = arith.constant dense<0.000000e+00> : vector<4x128xf32>
    %17 = tpu.matmul %16, %3, %cst_9 {dimension_numbers = #tpu.dot_dimension_numbers<[1], [0], [0], [1], [0, 0, 1, 1], [], []>} : vector<4x128xbf16>, vector<128x128xbf16>, vector<4x128xf32> -> vector<4x128xf32>
    %18 = vector.broadcast %8 : vector<1x128xf32> to vector<4x128xf32>
    %19 = arith.addf %17, %18 : vector<4x128xf32>
    %cst_10 = arith.constant 0.000000e+00 : f32
    %20 = vector.broadcast %cst_10 : f32 to vector<4x128xf32>
    %21 = arith.maximumf %19, %20 : vector<4x128xf32>
    %22 = arith.truncf %21 : vector<4x128xf32> to vector<4x128xbf16>
    %cst_11 = arith.constant dense<0.000000e+00> : vector<4x128xf32>
    %23 = tpu.matmul %22, %4, %cst_11 {dimension_numbers = #tpu.dot_dimension_numbers<[1], [0], [0], [1], [0, 0, 1, 1], [], []>} : vector<4x128xbf16>, vector<128x128xbf16>, vector<4x128xf32> -> vector<4x128xf32>
    %24 = vector.broadcast %10 : vector<1x128xf32> to vector<4x128xf32>
    %25 = arith.addf %23, %24 : vector<4x128xf32>
    %c0_12 = arith.constant 0 : index
    %c0_13 = arith.constant 0 : index
    %26 = vector.load %arg3[%c0_12, %c0_13] : memref<4x128xf32, #tpu.memory_space<vmem>>, vector<4x128xf32>
    tpu.vector_store %arg3[%c0_12, %c0_13], %25 {strides = array<i32>} : memref<4x128xf32, #tpu.memory_space<vmem>>, vector<4x128xf32>,
    return
  }
  func.func @transform_0(%arg0: i32) -> (i32, i32) {
    %c0_i32 = arith.constant 0 : i32
    %c0_i32_0 = arith.constant 0 : i32
    return %arg0, %c0_i32 : i32, i32
  }
  func.func @transform_1(%arg0: i32) -> (i32, i32) {
    %c0_i32 = arith.constant 0 : i32
    %c0_i32_0 = arith.constant 0 : i32
    %c0_i32_1 = arith.constant 0 : i32
    return %c0_i32, %c0_i32_0 : i32, i32
  }
  func.func @transform_2(%arg0: i32) -> (i32, i32) {
    %c0_i32 = arith.constant 0 : i32
    %c0_i32_0 = arith.constant 0 : i32
    return %arg0, %c0_i32 : i32, i32
  }
}

</mosaic_0001>

<bundles_post_ra>
// kernel: _dqn_forward.1
= control target key start
LH: loop header
LB: loop body
LE: loop exit
PB: predicated region body
PF: predicated region fallthrough
CT: control target
= control target key end

     0   :  { %7 = vsyncpa [#allocation3], 0  ;;  %s614_s0 = inlined_call_operand.hbm [shape: f32[4,11], index: 0, kind: input, shape index: {}]   ;;  %s615_s1 = inlined_call_operand.hbm [shape: bf16[288,128], index: 1, kind: input, shape index: {}]   ;;  %s616_s2 = inlined_call_operand.hbm [shape: f32[4,128], index: 2, kind: output, shape index: {}]  }
   0x1   :  { %8 = vsyncpa [#allocation6], 0 }
   0x2   :  { %9 = vsyncpa [#allocation4], 0  ;;  %s525_s9 = smov [#allocation2]   ;;  %s526_s11 = smov [#allocation5]  }
   0x3   :  { %s16_s10 = sshll.u32 %s525_s9, 4  ;;  %s25_s12 = sshll.u32 %s526_s11, 4  ;;  %s17_s10 = int_to_ptr.vmem [resolvable:$true] %s16_s10  ;;  %s548_s12 = int_to_ptr.vmem [resolvable:$true] %s25_s12 }
   0x4   :  { %s453_s15 = scalar_lea.hbm %s614_s0, 64 }
   0x5   :  { %p454_p0 = scmp.ne.s32.totalorder %s614_s0, %s453_s15  ;;  %p457_p1 = scmp.lt.u32.totalorder %s453_s15, %s614_s0 }
   0x7   :  { %p459_p2 = pnand %p457_p1, %p454_p0 }
   0x9   :  { %462 = shalt.err (!%p459_p2)
}
   0xa   :  { %s463_s20 = scalar_lea.vmem %s17_s10, 64  ;;  %p468_p4 = scmp.lt.s32.totalorder %s17_s10, %s17_s10 }
   0xb   :  { %p464_p3 = scmp.ne.s32.totalorder %s17_s10, %s463_s20  ;;  %p469_p5 = scmp.lt.s32.totalorder %s463_s20, %s463_s20 }
   0xd   :  { %p470_p6 = por %p469_p5, %p468_p4 }
   0xf   :  { %p471_p7 = pnand %p470_p6, %p464_p3 }
  0x11   :  { %474 = shalt.err (!%p471_p7)
}
  0x12   :  { %19 = dma.hbm_to_vmem [thread:$0]  %s614_s0, 64, %s17_s10, [#allocation3]  }
  0x13   :  { %s475_s25 = scalar_lea.hbm %s615_s1, 2304 }
  0x14   :  { %p476_p8 = scmp.ne.s32.totalorder %s615_s1, %s475_s25  ;;  %p479_p9 = scmp.lt.u32.totalorder %s475_s25, %s615_s1 }
  0x16   :  { %p481_p10 = pnand %p479_p9, %p476_p8 }
  0x18   :  { %484 = shalt.err (!%p481_p10)
}
  0x19   :  { %s485_s30 = scalar_lea.vmem %s548_s12, 2304  ;;  %p490_p12 = scmp.lt.s32.totalorder %s548_s12, %s548_s12 }
  0x1a   :  { %p486_p11 = scmp.ne.s32.totalorder %s548_s12, %s485_s30  ;;  %p491_p13 = scmp.lt.s32.totalorder %s485_s30, %s485_s30 }
  0x1c   :  { %p492_p0 = por %p491_p13, %p490_p12 }
  0x1e   :  { %p493_p1 = pnand %p492_p0, %p486_p11 }
  0x20   :  { %496 = shalt.err (!%p493_p1)
}
  0x21   :  { %s527_s0 = smov 64   ;;  %s528_s3 = smov 4  }
  0x22   :  { %31 = dma.hbm_to_vmem [thread:$0]  %s615_s1, 2304, %s548_s12, [#allocation6], %s527_s0, %s527_s0, %s528_s3  }
  0x23   :  { %519 = dma.done.wait [#allocation3], 64  }
  0x24   :  { %520 = vsyncadd [#allocation3], 4294967232 }
  0x25   :  { %521 = dma.done.wait [#allocation6], 2304  }
  0x26   :  { %522 = vsyncadd [#allocation6], 4294964992  ;;  %vm92_vm0 = vcmask 1044480   ;;  %v529_v0 = vmov 0.0   ;;  %vm530_vm1 = vmmov 0   ;;  %vm93_vm2 = vcmask 1045504  }
  0x27   :  { %382 = vmatprep.subr.bf16.mxu0 %v529_v0  ;;  %388 = vmatprep.subr.bf16.mxu1 %v529_v0  ;;  %v531_v1 = vmov 65535   ;;  %v436_v4 = vld [vmem:[#allocation5] sm:$0x3f]   ;;  %v39_v5 = vld [vmem:[#allocation2] sm:$0xf]  ;;  %v437_v7 = vld [vmem:[#allocation5 + $0x8] sm:$0xff]   ;;  %v79_v22 = vlaneseq }
  0x28   :  { %384 = vmatprep.mubr.msk.bf16.mxu0 %vm530_vm1, %v529_v0  ;;  %404 = vmatprep.mubr.msk.bf16.mxu1 %vm530_vm1, %v529_v0  ;;  %v94_v2 = vsel %vm92_vm0, 4294967295, %v531_v1  ;;  %v40_v8 = vpack.c.bf16 %v39_v5, %v39_v5  ;;  %vm88_vm3 = vcmask 89088   ;;  %v438_v9 = vld [vmem:[#allocation5 + $0x10] sm:$0xff]   ;;  %v439_v10 = vld [vmem:[#allocation5 + $0x18] sm:$0xff]   ;;  %v440_v11 = vld [vmem:[#allocation5 + $0x20] sm:$0xff]   ;;  %s532_s1 = smov [#allocation7]  }
  0x29   :  { %v95_v3 = vsel %vm93_vm2, %v94_v2, 0  ;;  %389 = vmatpush3.bf16.msra.mxu1 %v437_v7  ;;  %v441_v12 = vld [vmem:[#allocation5 + $0x28] sm:$0xff]   ;;  %v442_v13 = vld [vmem:[#allocation5 + $0x30] sm:$0xff]   ;;  %v443_v14 = vld [vmem:[#allocation5 + $0x38] sm:$0xff]   ;;  %v80_v23 = vshrl.u32 %v79_v22, 7  ;;  %s334_s6 = sshll.u32 %s532_s1, 4  ;;  %s335_s6 = int_to_ptr.vmem [resolvable:$true] %s334_s6 }
  0x2a   :  { %v97_v6 = vand.u32 %v436_v4, %v95_v3  ;;  %390 = vmatprep.subr.bf16.mxu1 %v529_v0  ;;  %v444_v15 = vld [vmem:[#allocation5 + $0x40] sm:$0xff]   ;;  %v445_v16 = vld [vmem:[#allocation5 + $0x48] sm:$0xff]   ;;  %v446_v17 = vld [vmem:[#allocation5 + $0x50] sm:$0xff]   ;;  %s497_s7 = scalar_lea.vmem %s335_s6, 64  ;;  %p502_p3 = scmp.lt.s32.totalorder %s335_s6, %s335_s6 }
  0x2b   :  { %v447_v18 = vld [vmem:[#allocation5 + $0x58] sm:$0xff]   ;;  %v448_v19 = vld [vmem:[#allocation5 + $0x60] sm:$0xff]   ;;  %v449_v20 = vld [vmem:[#allocation5 + $0x68] sm:$0xff]   ;;  %v81_v26 = vsub.s32 0, %v80_v23  ;;  %v143_v37 = vsub.s32 1, %v80_v23  ;;  %v237_v48 = vsub.s32 2, %v80_v23  ;;  %p498_p2 = scmp.ne.s32.totalorder %s335_s6, %s497_s7  ;;  %p503_p4 = scmp.lt.s32.totalorder %s497_s7, %s497_s7 }
  0x2c   :  { %383 = vmatpush3.bf16.msra.mxu0 %v97_v6  ;;  %v450_v21 = vld [vmem:[#allocation5 + $0x70] sm:$0xff]   ;;  %v75_v24 = vld [vmem:[#allocation5 + $0x88] sm:$0x1]  ;;  %v451_v35 = vld [vmem:[#allocation5 + $0x78] sm:$0xff]  }
  0x2d   :  { %408 = vmatprep.subr.bf16.mxu0 %v529_v0  ;;  %391 = vmatpush3.bf16.msra.mxu1 %v438_v9  ;;  %v76_v25 = vunpack.c.l.bf16 %v75_v24  ;;  %v452_v36 = vld [vmem:[#allocation5 + $0x80] sm:$0xff]   ;;  %v77_v46 = vld [vmem:[#allocation5 + $0x88] sm:$0x2]  ;;  %p504_p5 = por %p503_p4, %p502_p3 }
  0x2e   :  { %392 = vmatprep.subr.bf16.mxu1 %v529_v0  ;;  %v78_v47 = vunpack.c.l.bf16 %v77_v46 }
  0x2f   :  { %385 = vmatmul.mubr.msk.bf16.vlgmr.msra.gmra.mrb[0].mxu0 %vm88_vm3, %v40_v8  ;;  %v82_v27 = vrot.slane %v76_v25, %v81_v26  ;;  %v144_v38 = vrot.slane %v76_v25, %v143_v37  ;;  %p505_p6 = pnand %p504_p5, %p498_p2 }
  0x30   :  { %424 = vmatprep.mubr.msk.bf16.mxu0 %vm530_vm1, %v529_v0  ;;  %409 = vmatpush3.bf16.msra.mxu0 %v445_v16  ;;  %v238_v49 = vrot.slane %v78_v47, %v237_v48 }
  0x31   :  { %393 = vmatpush3.bf16.msra.mxu1 %v439_v10  ;;  %410 = vmatprep.subr.bf16.mxu0 %v529_v0 }
  0x32   :  { %394 = vmatprep.subr.bf16.mxu1 %v529_v0 }
  0x34   :  { %411 = vmatpush3.bf16.msra.mxu0 %v446_v17 }
  0x35   :  { %395 = vmatpush3.bf16.msra.mxu1 %v440_v11  ;;  %412 = vmatprep.subr.bf16.mxu0 %v529_v0 }
  0x36   :  { %396 = vmatprep.subr.bf16.mxu1 %v529_v0 }
  0x38   :  { %413 = vmatpush3.bf16.msra.mxu0 %v447_v18 }
  0x39   :  { %397 = vmatpush3.bf16.msra.mxu1 %v441_v12  ;;  %414 = vmatprep.subr.bf16.mxu0 %v529_v0 }
  0x3a   :  { %398 = vmatprep.subr.bf16.mxu1 %v529_v0 }
  0x3c   :  { %415 = vmatpush3.bf16.msra.mxu0 %v448_v19 }
  0x3d   :  { %399 = vmatpush3.bf16.msra.mxu1 %v442_v13  ;;  %416 = vmatprep.subr.bf16.mxu0 %v529_v0 }
  0x3e   :  { %400 = vmatprep.subr.bf16.mxu1 %v529_v0 }
  0x40   :  { %417 = vmatpush3.bf16.msra.mxu0 %v449_v20 }
  0x41   :  { %401 = vmatpush3.bf16.msra.mxu1 %v443_v14  ;;  %418 = vmatprep.subr.bf16.mxu0 %v529_v0 }
  0x42   :  { %402 = vmatprep.subr.bf16.mxu1 %v529_v0 }
  0x44   :  { %419 = vmatpush3.bf16.msra.mxu0 %v450_v21 }
  0x45   :  { %403 = vmatpush3.bf16.msra.mxu1 %v444_v15  ;;  %420 = vmatprep.subr.bf16.mxu0 %v529_v0 }
  0x48   :  { %421 = vmatpush3.bf16.msra.mxu0 %v451_v35 }
  0x49   :  { %422 = vmatprep.subr.bf16.mxu0 %v529_v0 }
  0x4c   :  { %423 = vmatpush3.bf16.msra.mxu0 %v452_v36 }
 0x102   :  { %v133_v28 = vpop.f32.mrb[0].mxu0 }
 0x103   :  { %v134_v29 = vadd.f32 %v133_v28, %v82_v27  ;;  %v386_v30 = vpop.f32.mrb[1].mxu0 }
 0x104   :  { %v136_v31 = vpop.f32.mrb[2].mxu0 }
 0x105   :  { %v139_v32 = vmax.f32 %v134_v29, 0.0  ;;  %v387_v33 = vpop.f32.mrb[3].mxu0 }
 0x107   :  { %v140_v34 = vpack.c.bf16 %v139_v32, %v139_v32 }
 0x109   :  { %405 = vmatmul.mubr.bf16.vlgmr.msra.gmra.mrb[0].mxu1 %v140_v34 }
 0x1dc   :  { %v227_v39 = vpop.f32.mrb[0].mxu1 }
 0x1dd   :  { %v228_v40 = vadd.f32 %v227_v39, %v144_v38  ;;  %v406_v41 = vpop.f32.mrb[1].mxu1 }
 0x1de   :  { %v230_v42 = vpop.f32.mrb[2].mxu1 }
 0x1df   :  { %v233_v43 = vmax.f32 %v228_v40, 0.0  ;;  %v407_v44 = vpop.f32.mrb[3].mxu1 }
 0x1e1   :  { %v234_v45 = vpack.c.bf16 %v233_v43, %v233_v43 }
 0x1e3   :  { %425 = vmatmul.mubr.bf16.vlgmr.msra.gmra.mrb[4].mxu0 %v234_v45 }
 0x2b6   :  { %v321_v50 = vpop.f32.mrb[4].mxu0 }
 0x2b7   :  { %v322_v51 = vadd.f32 %v321_v50, %v238_v49  ;;  %v426_v52 = vpop.f32.mrb[5].mxu0 }
 0x2b8   :  { %v324_v53 = vpop.f32.mrb[6].mxu0 }
 0x2b9   :  { %327 = vst [vmem:[#allocation7] sm:$0xf] %v322_v51  ;;  %v427_v54 = vpop.f32.mrb[7].mxu0 }
 0x2ba   :  { %508 = shalt.err (!%p505_p6)
}
 0x2bb   :  { %s509_s10 = scalar_lea.hbm %s616_s2, 64 }
 0x2bc   :  { %p510_p7 = scmp.ne.s32.totalorder %s616_s2, %s509_s10  ;;  %p513_p8 = scmp.lt.u32.totalorder %s509_s10, %s616_s2 }
 0x2be   :  { %p515_p9 = pnand %p513_p8, %p510_p7 }
 0x2c0   :  { %518 = shalt.err (!%p515_p9)
}
 0x2c1   :  { %337 = dma.vmem_to_hbm [thread:$0]  %s335_s6, 64, %s616_s2, [#allocation4]  }
 0x2c2   :  { %523 = dma.done.wait [#allocation4], 64  }
 0x2c3   :  { %524 = vsyncadd [#allocation4], 4294967232 }
 0x2c4   :  { %341 = vsyncpa [#allocation3], 1 }
 0x2c5   :  { %342 = vsyncpa [#allocation6], 1 }
 0x2c6   :  { %343 = vsyncpa [#allocation4], 1 }

</bundles_post_ra>
